<compile_context>
chip_gen: v7x
topology: tpu7x:2x2x1
jax: 0.10.0
libtpu: 0.0.40
codegen_flags: <defaults>
</compile_context>

<pallas_src>
import jax
import jax.numpy as jnp
from jax.experimental import pallas as pl
from jax.experimental.pallas import tpu as pltpu


def _round_up(x, m):
    return ((x + m - 1) // m) * m


def _choose_b_tile(batch):
    # ~2 tiles for medium batches (feeds both v7x TensorCores), capped at 8192
    # rows (VMEM-safe on v5e/v6e/v7x), lane-aligned, floor of 128.
    bt = _round_up(pl.cdiv(batch, 2), 128)
    return max(128, min(bt, 8192))


def mlp_kernel(x_ref, w1t_ref, b1_ref, w2_ref, b2_ref, o_ref):
    # x_ref  : (b_tile, d_in)   natural layout, batch on sublanes
    # w1t_ref: (d_in, hidden)   PyTorch layer-1 weight, pre-transposed
    # b1_ref : (1, hidden)   w2_ref: (hidden, 1)   b2_ref: (1, 1)
    # o_ref  : (b_tile, 1)
    h = jnp.dot(x_ref[...], w1t_ref[...],
                preferred_element_type=jnp.float32,
                precision=jax.lax.Precision.HIGHEST)          # (b_tile, H)  MXU
    h = jnp.maximum(h + b1_ref[...], 0.0)                     # bias + ReLU  VPU
    y = jnp.dot(h, w2_ref[...],
                preferred_element_type=jnp.float32,
                precision=jax.lax.Precision.HIGHEST)          # (b_tile, 1)
    o_ref[...] = (y + b2_ref[...]).astype(o_ref.dtype)


def simple_model_forward(x, w1, b1, w2, b2, b_tile=None):
    batch, d_in = x.shape
    hidden = w1.shape[0]
    out_dim = w2.shape[0]
    assert out_dim == 1, "kernel specialized for output_dim == 1"

    if b_tile is None:
        b_tile = _choose_b_tile(batch)
    num_tiles = pl.cdiv(batch, b_tile)
    batch_pad = num_tiles * b_tile

    in_dtype = x.dtype
    f32 = jnp.float32

    # Pad only the batch axis, and only when needed (bounded by tile choice).
    x_in = x if batch_pad == batch else jnp.pad(x, ((0, batch_pad - batch), (0, 0)))

    # Tiny one-time weight re-layout (a few KB; stays VMEM-resident across tiles).
    w1t = w1.astype(in_dtype).T                    # (d_in, hidden)
    b1c = b1.astype(f32).reshape(1, hidden)
    w2c = w2.astype(f32).reshape(hidden, 1)
    b2c = b2.astype(f32).reshape(1, 1)

    itemsize = jnp.dtype(in_dtype).itemsize
    flops = 2 * batch_pad * d_in * hidden + 2 * batch_pad * hidden + batch_pad * hidden
    bytes_accessed = (batch_pad * d_in * itemsize                    # x stream
                      + (w1t.size * itemsize) + 4 * (b1c.size + w2c.size + b2c.size)
                      + batch_pad * jnp.dtype(in_dtype).itemsize)    # output column

    out_col = pl.pallas_call(
        mlp_kernel,
        out_shape=jax.ShapeDtypeStruct((batch_pad, 1), in_dtype),
        grid=(num_tiles,),
        in_specs=[
            pl.BlockSpec((b_tile, d_in), lambda i: (i, 0)),   # x: tile batch only
            pl.BlockSpec((d_in, hidden), lambda i: (0, 0)),   # W1^T: VMEM-resident
            pl.BlockSpec((1, hidden), lambda i: (0, 0)),      # b1
            pl.BlockSpec((hidden, 1), lambda i: (0, 0)),      # w2 column
            pl.BlockSpec((1, 1), lambda i: (0, 0)),           # b2
        ],
        out_specs=pl.BlockSpec((b_tile, 1), lambda i: (i, 0)),
        compiler_params=pltpu.CompilerParams(
            dimension_semantics=("parallel",),                # both TCs on v7x
        ),
        cost_estimate=pl.CostEstimate(
            flops=flops, transcendentals=0, bytes_accessed=int(bytes_accessed)),
    )(x_in, w1t, b1c, w2c, b2c)

    return out_col[:batch]


def init_params(key, input_dim=50, hidden_dim=32, output_dim=1):
    # PyTorch nn.Linear layout/init: W (out, in), U(-1/sqrt(fan_in), 1/sqrt(fan_in)).
    k1, k2, k3, k4 = jax.random.split(key, 4)
    s1 = 1.0 / jnp.sqrt(input_dim)
    s2 = 1.0 / jnp.sqrt(hidden_dim)
    w1 = jax.random.uniform(k1, (hidden_dim, input_dim), jnp.float32, -s1, s1)
    b1 = jax.random.uniform(k2, (hidden_dim,), jnp.float32, -s1, s1)
    w2 = jax.random.uniform(k3, (output_dim, hidden_dim), jnp.float32, -s2, s2)
    b2 = jax.random.uniform(k4, (output_dim,), jnp.float32, -s2, s2)
    return w1, b1, w2, b2


if __name__ == "__main__":
    key = jax.random.PRNGKey(0)
    kx, kp = jax.random.split(key)

    batch, input_dim, hidden_dim, output_dim = 8, 50, 32, 1
    x = jax.random.normal(kx, (batch, input_dim), jnp.float32)
    w1, b1, w2, b2 = init_params(kp, input_dim, hidden_dim, output_dim)

    out = simple_model_forward(x, w1, b1, w2, b2)
    out = jax.block_until_ready(out)

    # Plain-JAX reference (PyTorch orientation: y = relu(x W1^T + b1) W2^T + b2).
    ref = jnp.maximum(x @ w1.T + b1, 0.0) @ w2.T + b2
    assert out.shape == (batch, output_dim)
    assert jnp.allclose(out, ref, atol=1e-4, rtol=1e-4)

    print("KERNEL_OK")
</pallas_src>

<mosaic_0001>
module attributes {stable_mosaic.version = 11 : i64} {
  func.func @mlp_kernel(%arg0: i32, %arg1: memref<128x50xf32, #tpu.memory_space<vmem>>, %arg2: memref<50x32xf32, #tpu.memory_space<vmem>>, %arg3: memref<1x32xf32, #tpu.memory_space<vmem>>, %arg4: memref<32x1xf32, #tpu.memory_space<vmem>>, %arg5: memref<1x1xf32, #tpu.memory_space<vmem>>, %arg6: memref<128x1xf32, #tpu.memory_space<vmem>>) attributes {dimension_semantics = [#tpu.dimension_semantics<parallel>], iteration_bounds = array<i64: 1>, scalar_prefetch = 0 : i64, scratch_operands = 0 : i64, tpu.core_type = #tpu.core_type<tc>, window_params = [{transform_indices = @transform_0, window_bounds = array<i64: 128, 50>}, {pipeline_mode = #tpu.pipeline_mode<synchronous>, transform_indices = @transform_1, window_bounds = array<i64: 50, 32>}, {pipeline_mode = #tpu.pipeline_mode<synchronous>, transform_indices = @transform_2, window_bounds = array<i64: 1, 32>}, {pipeline_mode = #tpu.pipeline_mode<synchronous>, transform_indices = @transform_3, window_bounds = array<i64: 32, 1>}, {pipeline_mode = #tpu.pipeline_mode<synchronous>, transform_indices = @transform_4, window_bounds = array<i64: 1, 1>}, {transform_indices = @transform_5, window_bounds = array<i64: 128, 1>}]} {
    %c0 = arith.constant 0 : index
    %c0_0 = arith.constant 0 : index
    %0 = vector.load %arg1[%c0, %c0_0] : memref<128x50xf32, #tpu.memory_space<vmem>>, vector<128x50xf32>
    %c0_1 = arith.constant 0 : index
    %c0_2 = arith.constant 0 : index
    %1 = vector.load %arg2[%c0_1, %c0_2] : memref<50x32xf32, #tpu.memory_space<vmem>>, vector<50x32xf32>
    %cst = arith.constant dense<0.000000e+00> : vector<128x32xf32>
    %2 = tpu.matmul %0, %1, %cst {dimension_numbers = #tpu.dot_dimension_numbers<[1], [0], [0], [1], [0, 0, 1, 1], [], []>, precision = #tpu.contract_precision<fp32>} : vector<128x50xf32>, vector<50x32xf32>, vector<128x32xf32> -> vector<128x32xf32>
    %c0_3 = arith.constant 0 : index
    %c0_4 = arith.constant 0 : index
    %3 = vector.load %arg3[%c0_3, %c0_4] : memref<1x32xf32, #tpu.memory_space<vmem>>, vector<1x32xf32>
    %4 = vector.broadcast %3 : vector<1x32xf32> to vector<128x32xf32>
    %5 = arith.addf %2, %4 : vector<128x32xf32>
    %cst_5 = arith.constant 0.000000e+00 : f32
    %6 = vector.broadcast %cst_5 : f32 to vector<128x32xf32>
    %7 = arith.maximumf %5, %6 : vector<128x32xf32>
    %c0_6 = arith.constant 0 : index
    %c0_7 = arith.constant 0 : index
    %8 = vector.load %arg4[%c0_6, %c0_7] : memref<32x1xf32, #tpu.memory_space<vmem>>, vector<32x1xf32>
    %cst_8 = arith.constant dense<0.000000e+00> : vector<128x1xf32>
    %9 = tpu.matmul %7, %8, %cst_8 {dimension_numbers = #tpu.dot_dimension_numbers<[1], [0], [0], [1], [0, 0, 1, 1], [], []>, precision = #tpu.contract_precision<fp32>} : vector<128x32xf32>, vector<32x1xf32>, vector<128x1xf32> -> vector<128x1xf32>
    %c0_9 = arith.constant 0 : index
    %c0_10 = arith.constant 0 : index
    %10 = vector.load %arg5[%c0_9, %c0_10] : memref<1x1xf32, #tpu.memory_space<vmem>>, vector<1x1xf32>
    %11 = vector.broadcast %10 : vector<1x1xf32> to vector<128x1xf32>
    %12 = arith.addf %9, %11 : vector<128x1xf32>
    %c0_11 = arith.constant 0 : index
    %c0_12 = arith.constant 0 : index
    %13 = vector.load %arg6[%c0_11, %c0_12] : memref<128x1xf32, #tpu.memory_space<vmem>>, vector<128x1xf32>
    tpu.vector_store %arg6[%c0_11, %c0_12], %12 {strides = array<i32>} : memref<128x1xf32, #tpu.memory_space<vmem>>, vector<128x1xf32>,
    return
  }
  func.func @transform_0(%arg0: i32) -> (i32, i32) {
    %c0_i32 = arith.constant 0 : i32
    %c0_i32_0 = arith.constant 0 : i32
    return %arg0, %c0_i32 : i32, i32
  }
  func.func @transform_1(%arg0: i32) -> (i32, i32) {
    %c0_i32 = arith.constant 0 : i32
    %c0_i32_0 = arith.constant 0 : i32
    %c0_i32_1 = arith.constant 0 : i32
    return %c0_i32, %c0_i32_0 : i32, i32
  }
  func.func @transform_2(%arg0: i32) -> (i32, i32) {
    %c0_i32 = arith.constant 0 : i32
    %c0_i32_0 = arith.constant 0 : i32
    %c0_i32_1 = arith.constant 0 : i32
    return %c0_i32, %c0_i32_0 : i32, i32
  }
  func.func @transform_3(%arg0: i32) -> (i32, i32) {
    %c0_i32 = arith.constant 0 : i32
    %c0_i32_0 = arith.constant 0 : i32
    %c0_i32_1 = arith.constant 0 : i32
    return %c0_i32, %c0_i32_0 : i32, i32
  }
  func.func @transform_4(%arg0: i32) -> (i32, i32) {
    %c0_i32 = arith.constant 0 : i32
    %c0_i32_0 = arith.constant 0 : i32
    %c0_i32_1 = arith.constant 0 : i32
    return %c0_i32, %c0_i32_0 : i32, i32
  }
  func.func @transform_5(%arg0: i32) -> (i32, i32) {
    %c0_i32 = arith.constant 0 : i32
    %c0_i32_0 = arith.constant 0 : i32
    return %arg0, %c0_i32 : i32, i32
  }
}

</mosaic_0001>

<bundles_post_ra>
// kernel: tpu_custom_call.1
= control target key start
LH: loop header
LB: loop body
LE: loop exit
PB: predicated region body
PF: predicated region fallthrough
CT: control target
= control target key end

     0   :  { %vm101_vm0 = vcmask 1041408   ;;  %vm52_vm1 = vcmask 408576   ;;  %vm1301_vm2 = vcmask 261120   ;;  %vm2480_vm3 = vcmask 7168   ;;  %s4410_s1 = inlined_call_operand.vmem [shape: f32[50,32], index: 1, kind: input, shape index: {}]   ;;  %s4411_s0 = inlined_call_operand.vmem [shape: f32[128,50], index: 0, kind: input, shape index: {}]   ;;  %s4412_s3 = inlined_call_operand.vmem [shape: f32[32,1], index: 3, kind: input, shape index: {}]   ;;  %s4413_s2 = inlined_call_operand.vmem [shape: f32[1,32], index: 2, kind: input, shape index: {}]   ;;  %s4414_s4 = inlined_call_operand.<no memory space> [shape: f32[1,1], index: 4, kind: input, shape index: {}]   ;;  %s4415_s5 = inlined_call_operand.vmem [shape: f32[128,1], index: 5, kind: output, shape index: {}]  }
   0x1   :  { %v38_v0 = vld [vmem:[%s4410_s1] sm:$0xff]  ;;  %v39_v1 = vld [vmem:[%s4410_s1 + $0x8] sm:$0xff]  ;;  %v40_v2 = vld [vmem:[%s4410_s1 + $0x10] sm:$0xff] }
   0x2   :  { %v106_v3 = vand.u32 4294901760, %v38_v0  ;;  %v109_v4 = vand.u32 4294901760, %v39_v1  ;;  %v3535_v5 = vld [vmem:[%s4410_s1 + $0x18] sm:$0xff]  ;;  %v112_v6 = vand.u32 4294901760, %v40_v2  ;;  %v3540_v7 = vld [vmem:[%s4410_s1 + $0x20] sm:$0xff]  ;;  %v3545_v8 = vld [vmem:[%s4410_s1 + $0x28] sm:$0xff] }
   0x3   :  { %v115_v9 = vand.u32 4294901760, %v3535_v5  ;;  %v118_v10 = vand.u32 4294901760, %v3540_v7  ;;  %v121_v11 = vand.u32 4294901760, %v3545_v8  ;;  %v44_v12 = vld [vmem:[%s4410_s1 + $0x30] sm:$0x3]  ;;  %v22_v13 = vld [vmem:[%s4411_s0] sm:$0xff] }
   0x4   :  { %v3556_v14 = vpack.c.bf16 %v109_v4, %v106_v3  ;;  %v3558_v15 = vsel %vm101_vm0, %v44_v12, 0  ;;  %v54_v16 = vsel %vm52_vm1, %v22_v13, 0  ;;  %v23_v17 = vld [vmem:[%s4411_s0 + $0x8] sm:$0xff]  ;;  %v3564_v18 = vsub.f32 %v38_v0, %v106_v3  ;;  %v24_v19 = vld [vmem:[%s4411_s0 + $0x10] sm:$0xff]  ;;  %v25_v20 = vld [vmem:[%s4411_s0 + $0x18] sm:$0xff] }
   0x5   :  { %v3574_v21 = vpack.c.bf16 %v115_v9, %v112_v6  ;;  %v3580_v22 = vpack.c.bf16 %v121_v11, %v118_v10  ;;  %v3583_v23 = vand.u32 4294901760, %v3558_v15  ;;  %v3585_v24 = vand.u32 4294901760, %v54_v16  ;;  %v26_v25 = vld [vmem:[%s4411_s0 + $0x20] sm:$0xff]  ;;  %v27_v34 = vld [vmem:[%s4411_s0 + $0x28] sm:$0xff]  ;;  %v28_v59 = vld [vmem:[%s4411_s0 + $0x30] sm:$0xff] }
   0x6   :  { %3182 = vmatprep.subr.bf16.mxu0 %v3556_v14  ;;  %v57_v26 = vsel %vm52_vm1, %v23_v17, 0  ;;  %v340_v27 = vand.u32 4294901760, %v3564_v18  ;;  %v3593_v28 = vsub.f32 %v39_v1, %v109_v4  ;;  %v60_v29 = vsel %vm52_vm1, %v24_v19, 0  ;;  %v29_v0 = vld [vmem:[%s4411_s0 + $0x38] sm:$0xff] }
   0x7   :  { %3184 = vmatpush3.bf16.msra.mxu0 %v3556_v14  ;;  %v3598_v30 = vsub.f32 %v54_v16, %v3585_v24  ;;  %v3600_v31 = vand.u32 4294901760, %v57_v26  ;;  %v3602_v32 = vand.u32 4294901760, %v60_v29  ;;  %v63_v33 = vsel %vm52_vm1, %v25_v20, 0 }
   0x8   :  { %3186 = vmatprep.subr.bf16.mxu0 %v3574_v21  ;;  %v341_v35 = vsub.f32 %v3564_v18, %v340_v27  ;;  %v347_v36 = vand.u32 4294901760, %v3593_v28  ;;  %v3613_v37 = vand.u32 4294901760, %v63_v33  ;;  %v66_v38 = vsel %vm52_vm1, %v26_v25, 0 }
   0x9   :  { %v4427_v39 = vand.u32 4294901760, %v3598_v30  ;;  %v3618_v40 = vsub.f32 %v57_v26, %v3600_v31  ;;  %v3621_v41 = vsub.f32 %v60_v29, %v3602_v32  ;;  %v3623_v42 = vand.u32 4294901760, %v66_v38 }
   0xa   :  { %v342_v43 = vand.u32 4294901760, %v341_v35  ;;  %v348_v44 = vsub.f32 %v3593_v28, %v347_v36  ;;  %v3629_v45 = vsub.f32 %v63_v33, %v3613_v37  ;;  %v69_v46 = vsel %vm52_vm1, %v27_v34, 0 }
   0xb   :  { %3188 = vmatpush3.bf16.msra.mxu0 %v3574_v21  ;;  %v180_v47 = vsub.f32 %v3598_v30, %v4427_v39  ;;  %v4425_v48 = vand.u32 4294901760, %v3618_v40  ;;  %v4424_v49 = vand.u32 4294901760, %v3621_v41  ;;  %v3639_v50 = vsub.f32 %v66_v38, %v3623_v42 }
   0xc   :  { %3190 = vmatprep.subr.bf16.mxu0 %v3580_v22  ;;  %v349_v51 = vand.u32 4294901760, %v348_v44  ;;  %v4423_v52 = vand.u32 4294901760, %v3629_v45  ;;  %v3643_v53 = vand.u32 4294901760, %v69_v46  ;;  %v3645_v54 = vsub.f32 %v40_v2, %v112_v6  ;;  %v30_v6 = vld [vmem:[%s4411_s0 + $0x40] sm:$0xff] }
   0xd   :  { %v181_v55 = vand.u32 4294901760, %v180_v47  ;;  %v190_v56 = vsub.f32 %v3618_v40, %v4425_v48  ;;  %v200_v57 = vsub.f32 %v3621_v41, %v4424_v49  ;;  %v4421_v58 = vand.u32 4294901760, %v3639_v50 }
   0xe   :  { %v3193_v60 = vpack.c.bf16 %v349_v51, %v342_v43  ;;  %v210_v61 = vsub.f32 %v3629_v45, %v4423_v52  ;;  %v3661_v62 = vsub.f32 %v69_v46, %v3643_v53  ;;  %v354_v63 = vand.u32 4294901760, %v3645_v54  ;;  %v32_v46 = vld [vmem:[%s4411_s0 + $0x50] sm:$0xff] }
   0xf   :  { %3192 = vmatpush3.bf16.msra.mxu0 %v3580_v22  ;;  %2775 = vmatprep.mubr.f32.mxu0 %v181_v55  ;;  %v191_v1 = vand.u32 4294901760, %v190_v56  ;;  %v201_v2 = vand.u32 4294901760, %v200_v57  ;;  %v220_v3 = vsub.f32 %v3639_v50, %v4421_v58  ;;  %v3674_v4 = vsub.f32 %v3535_v5, %v115_v9  ;;  %v31_v5 = vld [vmem:[%s4411_s0 + $0x48] sm:$0xff] }
  0x10   :  { %2773 = vmatprep.subr.mxu0 %v3583_v23  ;;  %v211_v12 = vand.u32 4294901760, %v210_v61  ;;  %v4420_v13 = vand.u32 4294901760, %v3661_v62  ;;  %v355_v16 = vsub.f32 %v3645_v54, %v354_v63  ;;  %v72_v17 = vsel %vm52_vm1, %v28_v59, 0 }
  0x11   :  { %v221_v9 = vand.u32 4294901760, %v220_v3  ;;  %v361_v19 = vand.u32 4294901760, %v3674_v4  ;;  %v3689_v20 = vand.u32 4294901760, %v72_v17  ;;  %v75_v25 = vsel %vm52_vm1, %v29_v0, 0 }
  0x12   :  { %v230_v26 = vsub.f32 %v3661_v62, %v4420_v13  ;;  %v356_v29 = vand.u32 4294901760, %v355_v16  ;;  %v3695_v33 = vand.u32 4294901760, %v75_v25  ;;  %v78_v34 = vsel %vm52_vm1, %v30_v6, 0 }
  0x13   :  { %2774 = vmatpush3.msra.mxu0 %v3583_v23  ;;  %v362_v35 = vsub.f32 %v3674_v4, %v361_v19  ;;  %v3703_v38 = vsub.f32 %v72_v17, %v3689_v20  ;;  %v3705_v43 = vand.u32 4294901760, %v78_v34  ;;  %v81_v44 = vsel %vm52_vm1, %v31_v5, 0 }
  0x14   :  { %2776 = vmatmul.mubr.f32.vlgmr.msra.gmra.mrb[0].mxu0 %v191_v1  ;;  %3194 = vmatprep.subr.bf16.mxu0 %v3193_v60  ;;  %v231_v47 = vand.u32 4294901760, %v230_v26  ;;  %v3712_v51 = vsub.f32 %v75_v25, %v3695_v33  ;;  %v3714_v55 = vand.u32 4294901760, %v81_v44  ;;  %v3719_v56 = vsub.f32 %v3540_v7, %v118_v10  ;;  %v34_v26 = vld [vmem:[%s4411_s0 + $0x60] sm:$0xff] }
  0x15   :  { %3196 = vmatpush3.bf16.msra.mxu0 %v3193_v60  ;;  %2778 = vmatprep.mubr.f32.mxu0 %v201_v2  ;;  %v363_v57 = vand.u32 4294901760, %v362_v35  ;;  %v4418_v59 = vand.u32 4294901760, %v3703_v38  ;;  %v3723_v61 = vsub.f32 %v78_v34, %v3705_v43  ;;  %v3728_v0 = vsub.f32 %v3545_v8, %v121_v11  ;;  %v33_v60 = vld [vmem:[%s4411_s0 + $0x58] sm:$0xff] }
  0x16   :  { %v4417_v1 = vand.u32 4294901760, %v3712_v51  ;;  %v3732_v3 = vsub.f32 %v81_v44, %v3714_v55  ;;  %v368_v7 = vand.u32 4294901760, %v3719_v56  ;;  %v84_v10 = vsel %vm52_vm1, %v32_v46, 0  ;;  %v35_v44 = vld [vmem:[%s4411_s0 + $0x68] sm:$0xff] }
  0x17   :  { %v3197_v2 = vpack.c.bf16 %v363_v57, %v356_v29  ;;  %v240_v6 = vsub.f32 %v3703_v38, %v4418_v59  ;;  %v4416_v8 = vand.u32 4294901760, %v3723_v61  ;;  %v375_v11 = vand.u32 4294901760, %v3728_v0 }
  0x18   :  { %2779 = vmatmul.mubr.f32.gmra.mrb[2].mxu0 %v211_v12  ;;  %v250_v16 = vsub.f32 %v3712_v51, %v4417_v1  ;;  %v4419_v17 = vand.u32 4294901760, %v3732_v3  ;;  %v369_v5 = vsub.f32 %v3719_v56, %v368_v7  ;;  %v3751_v25 = vand.u32 4294901760, %v84_v10 }
  0x19   :  { %2781 = vmatprep.mubr.f32.mxu0 %v221_v9  ;;  %3198 = vmatprep.subr.bf16.mxu0 %v3197_v2  ;;  %v241_v29 = vand.u32 4294901760, %v240_v6  ;;  %v260_v12 = vsub.f32 %v3723_v61, %v4416_v8  ;;  %v376_v34 = vsub.f32 %v3728_v0, %v375_v11  ;;  %v87_v35 = vsel %vm52_vm1, %v33_v60, 0  ;;  %v36_v60 = vld [vmem:[%s4411_s0 + $0x70] sm:$0xff] }
  0x1a   :  { %3200 = vmatpush3.bf16.msra.mxu0 %v3197_v2  ;;  %v251_v46 = vand.u32 4294901760, %v250_v16  ;;  %v370_v57 = vand.u32 4294901760, %v369_v5  ;;  %v3767_v9 = vsub.f32 %v84_v10, %v3751_v25  ;;  %v270_v6 = vsub.f32 %v3732_v3, %v4419_v17  ;;  %v37_v2 = vld [vmem:[%s4411_s0 + $0x78] sm:$0xff] }
  0x1b   :  { %v377_v8 = vand.u32 4294901760, %v376_v34  ;;  %v3772_v1 = vand.u32 4294901760, %v87_v35  ;;  %v90_v59 = vsel %vm52_vm1, %v34_v26, 0  ;;  %v261_v10 = vand.u32 4294901760, %v260_v12 }
  0x1c   :  { %2782 = vmatmul.mubr.f32.gmra.mrb[4].mxu0 %v231_v47  ;;  %v4422_v16 = vand.u32 4294901760, %v3767_v9  ;;  %v3782_v5 = vand.u32 4294901760, %v90_v59  ;;  %v93_v34 = vsel %vm52_vm1, %v35_v44, 0  ;;  %v3792_v58 = vsub.f32 %v3558_v15, %v3583_v23 }
  0x1d   :  { %2784 = vmatprep.mubr.f32.mxu0 %v241_v29  ;;  %v3201_v17 = vpack.c.bf16 %v377_v8, %v370_v57  ;;  %v3786_v26 = vsub.f32 %v87_v35, %v3772_v1  ;;  %v3788_v13 = vand.u32 4294901760, %v93_v34  ;;  %v96_v44 = vsel %vm52_vm1, %v36_v60, 0 }
  0x1e   :  { %v280_v47 = vsub.f32 %v3767_v9, %v4422_v16  ;;  %v3798_v12 = vsub.f32 %v90_v59, %v3782_v5  ;;  %v99_v8 = vsel %vm52_vm1, %v37_v2, 0  ;;  %v3807_v15 = vand.u32 4294901760, %v3792_v58 }
  0x1f   :  { %3202 = vmatprep.subr.bf16.mxu0 %v3201_v17  ;;  %v4426_v29 = vand.u32 4294901760, %v3786_v26  ;;  %v3804_v35 = vsub.f32 %v93_v34, %v3788_v13  ;;  %v3809_v57 = vand.u32 4294901760, %v96_v44  ;;  %v271_v16 = vand.u32 4294901760, %v270_v6 }
  0x20   :  { %2785 = vmatmul.mubr.f32.gmra.mrb[6].mxu0 %v251_v46  ;;  %v281_v52 = vand.u32 4294901760, %v280_v47  ;;  %v299_v59 = vand.u32 4294901760, %v3798_v12  ;;  %v3812_v49 = vand.u32 4294901760, %v99_v8  ;;  %v383_v34 = vsub.f32 %v3792_v58, %v3807_v15 }
  0x21   :  { %2787 = vmatprep.mubr.f32.mxu0 %v261_v10  ;;  %3204 = vmatpush3.bf16.msra.mxu0 %v3201_v17  ;;  %v290_v60 = vsub.f32 %v3786_v26, %v4426_v29  ;;  %v309_v2 = vand.u32 4294901760, %v3804_v35  ;;  %v3821_v48 = vsub.f32 %v96_v44, %v3809_v57  ;;  %v3205_v29 = vpack.c.bf16 %v3593_v28, %v3564_v18 }
  0x22   :  { %v300_v46 = vsub.f32 %v3798_v12, %v299_v59  ;;  %v3827_v6 = vsub.f32 %v99_v8, %v3812_v49  ;;  %v384_v10 = vand.u32 4294901760, %v383_v34  ;;  %v3840_v8 = vpack.c.bf16 %v347_v36, %v340_v27 }
  0x23   :  { %v291_v17 = vand.u32 4294901760, %v290_v60  ;;  %v319_v47 = vand.u32 4294901760, %v3821_v48  ;;  %v310_v44 = vsub.f32 %v3804_v35, %v309_v2  ;;  %v3846_v60 = vpack.c.bf16 %v361_v19, %v354_v63 }
  0x24   :  { %2788 = vmatmul.mubr.f32.gmra.mrb[8].mxu0 %v271_v16  ;;  %v329_v39 = vand.u32 4294901760, %v3827_v6  ;;  %v301_v16 = vand.u32 4294901760, %v300_v46  ;;  %2811 = vmatprep.subr.mxu0 %v384_v10  ;;  %v3855_v18 = vpack.c.bf16 %v375_v11, %v368_v7  ;;  %v3209_v63 = vpack.c.bf16 %v3674_v4, %v3645_v54 }
  0x25   :  { %2790 = vmatprep.mubr.f32.mxu0 %v281_v52  ;;  %v320_v34 = vsub.f32 %v3821_v48, %v319_v47  ;;  %2812 = vmatpush3.msra.mxu0 %v384_v10  ;;  %v311_v27 = vand.u32 4294901760, %v310_v44  ;;  %v3213_v19 = vpack.c.bf16 %v3728_v0, %v3719_v56  ;;  %v4433_v54 = vand.u32 4294901760, %v3598_v30 }
  0x26   :  { %3206 = vmatprep.subr.bf16.mxu0 %v3205_v29  ;;  %v330_v28 = vsub.f32 %v3827_v6, %v329_v39  ;;  %v4435_v4 = vand.u32 4294901760, %v3621_v41  ;;  %v4436_v56 = vand.u32 4294901760, %v3629_v45  ;;  %v4437_v0 = vand.u32 4294901760, %v3639_v50 }
  0x27   :  { %v321_v36 = vand.u32 4294901760, %v320_v34 }
  0x28   :  { %2791 = vmatmul.mubr.f32.gmra.mrb[10].mxu0 %v291_v17  ;;  %v331_v52 = vand.u32 4294901760, %v330_v28 }
  0x29   :  { %2793 = vmatprep.mubr.f32.mxu0 %v301_v16 }
  0x2c   :  { %2794 = vmatmul.mubr.f32.gmra.mrb[12].mxu0 %v311_v27 }
  0x2d   :  { %2796 = vmatprep.mubr.f32.mxu0 %v321_v36 }
  0x30   :  { %2797 = vmatmul.mubr.f32.gmra.mrb[14].mxu0 %v331_v52 }
  0x31   :  { %2813 = vmatprep.mubr.f32.mxu0 %v3585_v24 }
  0x34   :  { %2814 = vmatmul.mubr.f32.vlgmr.msra.gmra.mrb[0].mxu0 %v3600_v31 }
  0x35   :  { %3208 = vmatpush3.bf16.msra.mxu0 %v3205_v29  ;;  %2816 = vmatprep.mubr.f32.mxu0 %v3602_v32 }
  0x36   :  { %3210 = vmatprep.subr.bf16.mxu0 %v3209_v63 }
  0x38   :  { %2817 = vmatmul.mubr.f32.gmra.mrb[2].mxu0 %v3613_v37 }
  0x39   :  { %2819 = vmatprep.mubr.f32.mxu0 %v3623_v42  ;;  %3212 = vmatpush3.bf16.msra.mxu0 %v3209_v63 }
  0x3a   :  { %3214 = vmatprep.subr.bf16.mxu0 %v3213_v19 }
  0x3c   :  { %2820 = vmatmul.mubr.f32.gmra.mrb[4].mxu0 %v3643_v53 }
  0x3d   :  { %2822 = vmatprep.mubr.f32.mxu0 %v3689_v20  ;;  %3216 = vmatpush3.bf16.msra.mxu0 %v3213_v19 }
  0x3e   :  { %2849 = vmatprep.subr.mxu0 %v3792_v58 }
  0x40   :  { %2823 = vmatmul.mubr.f32.gmra.mrb[6].mxu0 %v3695_v33 }
  0x41   :  { %2825 = vmatprep.mubr.f32.mxu0 %v3705_v43  ;;  %2850 = vmatpush3.msra.mxu0 %v3792_v58  ;;  %v4434_v58 = vand.u32 4294901760, %v3618_v40 }
  0x42   :  { %3218 = vmatprep.subr.bf16.mxu0 %v3556_v14 }
  0x44   :  { %2826 = vmatmul.mubr.f32.gmra.mrb[8].mxu0 %v3714_v55 }
  0x45   :  { %2828 = vmatprep.mubr.f32.mxu0 %v3751_v25 }
  0x48   :  { %2829 = vmatmul.mubr.f32.gmra.mrb[10].mxu0 %v3772_v1 }
  0x49   :  { %2831 = vmatprep.mubr.f32.mxu0 %v3782_v5 }
  0x4c   :  { %2832 = vmatmul.mubr.f32.gmra.mrb[12].mxu0 %v3788_v13 }
  0x4d   :  { %2834 = vmatprep.mubr.f32.mxu0 %v3809_v57 }
  0x50   :  { %2835 = vmatmul.mubr.f32.gmra.mrb[14].mxu0 %v3812_v49 }
  0x51   :  { %2851 = vmatprep.mubr.f32.mxu0 %v3598_v30  ;;  %v4438_v30 = vand.u32 4294901760, %v3661_v62 }
  0x54   :  { %2852 = vmatmul.mubr.f32.vlgmr.msra.gmra.mrb[0].mxu0 %v3618_v40  ;;  %v4439_v40 = vand.u32 4294901760, %v3703_v38 }
  0x55   :  { %3220 = vmatpush3.bf16.msra.mxu0 %v3556_v14  ;;  %2854 = vmatprep.mubr.f32.mxu0 %v3621_v41  ;;  %v4440_v41 = vand.u32 4294901760, %v3712_v51 }
  0x56   :  { %3222 = vmatprep.subr.bf16.mxu0 %v3574_v21 }
  0x58   :  { %2855 = vmatmul.mubr.f32.gmra.mrb[2].mxu0 %v3629_v45  ;;  %v4441_v45 = vand.u32 4294901760, %v3723_v61 }
  0x59   :  { %2857 = vmatprep.mubr.f32.mxu0 %v3639_v50  ;;  %3224 = vmatpush3.bf16.msra.mxu0 %v3574_v21  ;;  %v4442_v50 = vand.u32 4294901760, %v3732_v3 }
  0x5a   :  { %3226 = vmatprep.subr.bf16.mxu0 %v3580_v22 }
  0x5c   :  { %2858 = vmatmul.mubr.f32.gmra.mrb[4].mxu0 %v3661_v62  ;;  %v4443_v62 = vand.u32 4294901760, %v3767_v9 }
  0x5d   :  { %2860 = vmatprep.mubr.f32.mxu0 %v3703_v38  ;;  %3228 = vmatpush3.bf16.msra.mxu0 %v3580_v22  ;;  %v4444_v38 = vand.u32 4294901760, %v3786_v26 }
  0x5e   :  { %2887 = vmatprep.subr.mxu0 %v3583_v23 }
  0x60   :  { %2861 = vmatmul.mubr.f32.gmra.mrb[6].mxu0 %v3712_v51 }
  0x61   :  { %2863 = vmatprep.mubr.f32.mxu0 %v3723_v61  ;;  %2888 = vmatpush3.msra.mxu0 %v3583_v23 }
  0x62   :  { %3230 = vmatprep.subr.bf16.mxu0 %v3840_v8 }
  0x64   :  { %2864 = vmatmul.mubr.f32.gmra.mrb[8].mxu0 %v3732_v3 }
  0x65   :  { %2866 = vmatprep.mubr.f32.mxu0 %v3767_v9 }
  0x68   :  { %2867 = vmatmul.mubr.f32.gmra.mrb[10].mxu0 %v3786_v26 }
  0x69   :  { %2869 = vmatprep.mubr.f32.mxu0 %v3798_v12 }
  0x6c   :  { %2870 = vmatmul.mubr.f32.gmra.mrb[12].mxu0 %v3804_v35  ;;  %v4046_v35 = vld [vmem:[%s4413_s2] ss:$0 sm:$0xff] }
  0x6d   :  { %2872 = vmatprep.mubr.f32.mxu0 %v3821_v48 }
  0x70   :  { %2873 = vmatmul.mubr.f32.gmra.mrb[14].mxu0 %v3827_v6 }
  0x71   :  { %2889 = vmatprep.mubr.f32.mxu0 %v4433_v54 }
  0x74   :  { %2890 = vmatmul.mubr.f32.vlgmr.msra.gmra.mrb[0].mxu0 %v4434_v58 }
  0x75   :  { %3232 = vmatpush3.bf16.msra.mxu0 %v3840_v8  ;;  %2892 = vmatprep.mubr.f32.mxu0 %v4435_v4 }
  0x76   :  { %3234 = vmatprep.subr.bf16.mxu0 %v3846_v60 }
  0x78   :  { %2893 = vmatmul.mubr.f32.gmra.mrb[2].mxu0 %v4436_v56 }
  0x79   :  { %2895 = vmatprep.mubr.f32.mxu0 %v4437_v0  ;;  %3236 = vmatpush3.bf16.msra.mxu0 %v3846_v60 }
  0x7a   :  { %3238 = vmatprep.subr.bf16.mxu0 %v3855_v18 }
  0x7c   :  { %2896 = vmatmul.mubr.f32.gmra.mrb[4].mxu0 %v4438_v30 }
  0x7d   :  { %2898 = vmatprep.mubr.f32.mxu0 %v4439_v40  ;;  %3240 = vmatpush3.bf16.msra.mxu0 %v3855_v18 }
  0x7e   :  { %2925 = vmatprep.subr.mxu0 %v3807_v15 }
  0x80   :  { %2899 = vmatmul.mubr.f32.gmra.mrb[6].mxu0 %v4440_v41 }
  0x81   :  { %2901 = vmatprep.mubr.f32.mxu0 %v4441_v45  ;;  %2926 = vmatpush3.msra.mxu0 %v3807_v15 }
  0x82   :  { %3242 = vmatprep.subr.bf16.mxu0 %v3556_v14 }
  0x84   :  { %2902 = vmatmul.mubr.f32.gmra.mrb[8].mxu0 %v4442_v50 }
  0x85   :  { %2904 = vmatprep.mubr.f32.mxu0 %v4443_v62 }
  0x88   :  { %2905 = vmatmul.mubr.f32.gmra.mrb[10].mxu0 %v4444_v38 }
  0x89   :  { %2907 = vmatprep.mubr.f32.mxu0 %v299_v59 }
  0x8c   :  { %2908 = vmatmul.mubr.f32.gmra.mrb[12].mxu0 %v309_v2 }
  0x8d   :  { %2910 = vmatprep.mubr.f32.mxu0 %v319_v47 }
  0x90   :  { %2911 = vmatmul.mubr.f32.gmra.mrb[14].mxu0 %v329_v39 }
  0x91   :  { %2927 = vmatprep.mubr.f32.mxu0 %v3585_v24 }
  0x94   :  { %2928 = vmatmul.mubr.f32.vlgmr.msra.gmra.mrb[0].mxu0 %v3600_v31 }
  0x95   :  { %3244 = vmatpush3.bf16.msra.mxu0 %v3556_v14  ;;  %2930 = vmatprep.mubr.f32.mxu0 %v3602_v32  ;;  %v1290_v14 = vld [vmem:[%s4412_s3] sm:$0xff] }
  0x96   :  { %3246 = vmatprep.subr.bf16.mxu0 %v3574_v21 }
  0x98   :  { %2931 = vmatmul.mubr.f32.gmra.mrb[2].mxu0 %v3613_v37 }
  0x99   :  { %2933 = vmatprep.mubr.f32.mxu0 %v3623_v42  ;;  %3248 = vmatpush3.bf16.msra.mxu0 %v3574_v21  ;;  %v1291_v21 = vld [vmem:[%s4412_s3 + $0x8] sm:$0xff] }
  0x9a   :  { %3250 = vmatprep.subr.bf16.mxu0 %v3580_v22 }
  0x9c   :  { %2934 = vmatmul.mubr.f32.gmra.mrb[4].mxu0 %v3643_v53 }
  0x9d   :  { %2936 = vmatprep.mubr.f32.mxu0 %v3689_v20  ;;  %3252 = vmatpush3.bf16.msra.mxu0 %v3580_v22  ;;  %v1351_v22 = vand.u32 4294901760, %v1290_v14 }
  0x9e   :  { %2963 = vmatprep.subr.mxu0 %v3583_v23 }
  0x9f   :  { %v4006_v48 = vsub.f32 %v1290_v14, %v1351_v22 }
  0xa0   :  { %2937 = vmatmul.mubr.f32.gmra.mrb[6].mxu0 %v3695_v33 }
  0xa1   :  { %2939 = vmatprep.mubr.f32.mxu0 %v3705_v43  ;;  %2964 = vmatpush3.msra.mxu0 %v3583_v23  ;;  %v1354_v23 = vand.u32 4294901760, %v1291_v21 }
  0xa4   :  { %2940 = vmatmul.mubr.f32.gmra.mrb[8].mxu0 %v3714_v55 }
  0xa5   :  { %2942 = vmatprep.mubr.f32.mxu0 %v3751_v25 }
  0xa8   :  { %2943 = vmatmul.mubr.f32.gmra.mrb[10].mxu0 %v3772_v1 }
  0xa9   :  { %2945 = vmatprep.mubr.f32.mxu0 %v3782_v5 }
  0xac   :  { %2946 = vmatmul.mubr.f32.gmra.mrb[12].mxu0 %v3788_v13 }
  0xad   :  { %2948 = vmatprep.mubr.f32.mxu0 %v3809_v57 }
  0xb0   :  { %2949 = vmatmul.mubr.f32.gmra.mrb[14].mxu0 %v3812_v49 }
  0xb1   :  { %2965 = vmatprep.mubr.f32.mxu0 %v3585_v24  ;;  %v3992_v24 = vpack.c.bf16 %v1354_v23, %v1351_v22 }
  0xb3   :  { %3254 = vmatprep.subr.bf16.mxu1 %v3992_v24 }
  0xb4   :  { %2966 = vmatmul.mubr.f32.vlgmr.msra.gmra.mrb[0].mxu0 %v3600_v31  ;;  %v1292_v31 = vld [vmem:[%s4412_s3 + $0x10] sm:$0xff]  ;;  %3256 = vmatpush3.bf16.msra.mxu1 %v3992_v24 }
  0xb5   :  { %2968 = vmatprep.mubr.f32.mxu0 %v3602_v32  ;;  %v1293_v32 = vld [vmem:[%s4412_s3 + $0x18] sm:$0xff] }
  0xb6   :  { %v1360_v39 = vand.u32 4294901760, %v1293_v32 }
  0xb8   :  { %2969 = vmatmul.mubr.f32.gmra.mrb[2].mxu0 %v3613_v37  ;;  %v1357_v37 = vand.u32 4294901760, %v1292_v31 }
  0xb9   :  { %2971 = vmatprep.mubr.f32.mxu0 %v3623_v42 }
  0xba   :  { %v4002_v42 = vpack.c.bf16 %v1360_v39, %v1357_v37  ;;  %v4021_v61 = vsub.f32 %v1292_v31, %v1357_v37 }
  0xbc   :  { %2972 = vmatmul.mubr.f32.gmra.mrb[4].mxu0 %v3643_v53  ;;  %3258 = vmatprep.subr.bf16.mxu1 %v4002_v42  ;;  %v1582_v53 = vand.u32 4294901760, %v4006_v48  ;;  %v1596_v3 = vand.u32 4294901760, %v4021_v61 }
  0xbd   :  { %2974 = vmatprep.mubr.f32.mxu0 %v3689_v20  ;;  %3260 = vmatpush3.bf16.msra.mxu1 %v4002_v42 }
  0xbe   :  { %v1583_v20 = vsub.f32 %v4006_v48, %v1582_v53  ;;  %v1597_v11 = vsub.f32 %v4021_v61, %v1596_v3 }
  0xc0   :  { %2975 = vmatmul.mubr.f32.gmra.mrb[6].mxu0 %v3695_v33  ;;  %v1598_v9 = vand.u32 4294901760, %v1597_v11 }
  0xc1   :  { %2977 = vmatprep.mubr.f32.mxu0 %v3705_v43  ;;  %v1584_v43 = vand.u32 4294901760, %v1583_v20 }
  0xc4   :  { %2978 = vmatmul.mubr.f32.gmra.mrb[8].mxu0 %v3714_v55 }
  0xc5   :  { %2980 = vmatprep.mubr.f32.mxu0 %v3751_v25 }
  0xc8   :  { %2981 = vmatmul.mubr.f32.gmra.mrb[10].mxu0 %v3772_v1  ;;  %v4023_v1 = vsub.f32 %v1293_v32, %v1360_v39 }
  0xc9   :  { %2983 = vmatprep.mubr.f32.mxu0 %v3782_v5 }
  0xca   :  { %v1603_v7 = vand.u32 4294901760, %v4023_v1  ;;  %v4041_v29 = vpack.c.bf16 %v4023_v1, %v4021_v61 }
  0xcc   :  { %2984 = vmatmul.mubr.f32.gmra.mrb[12].mxu0 %v3788_v13  ;;  %v1604_v25 = vsub.f32 %v4023_v1, %v1603_v7 }
  0xcd   :  { %2986 = vmatprep.mubr.f32.mxu0 %v3809_v57 }
  0xce   :  { %v1605_v5 = vand.u32 4294901760, %v1604_v25 }
  0xd0   :  { %2987 = vmatmul.mubr.f32.gmra.mrb[14].mxu0 %v3812_v49  ;;  %v4008_v49 = vsub.f32 %v1291_v21, %v1354_v23  ;;  %v4033_v26 = vpack.c.bf16 %v1605_v5, %v1598_v9 }
  0xd2   :  { %v1589_v13 = vand.u32 4294901760, %v4008_v49  ;;  %v4037_v12 = vpack.c.bf16 %v4008_v49, %v4006_v48  ;;  %v3289_v48 = vpack.c.bf16 %v1603_v7, %v1596_v3 }
  0xd4   :  { %v1590_v33 = vsub.f32 %v4008_v49, %v1589_v13 }
  0xd6   :  { %v1591_v51 = vand.u32 4294901760, %v1590_v33 }
  0xd8   :  { %v4018_v55 = vpack.c.bf16 %v1591_v51, %v1584_v43 }
  0xda   :  { %3262 = vmatprep.subr.bf16.mxu1 %v4018_v55 }
 0x187   :  { %v2967_v15 = vpop.f32.mrb[0].mxu0 }
 0x188   :  { %v3301_v57 = vadd.f32 %v2967_v15, %v4046_v35  ;;  %v1180_v59 = vpop.f32.mrb[1].mxu0 }
 0x189   :  { %v3302_v2 = vadd.f32 %v4046_v35, %v1180_v59 }
 0x18a   :  { %v1275_v46 = vmax.f32 %v3301_v57, 0.0 }
 0x18b   :  { %v1274_v6 = vmax.f32 %v3302_v2, 0.0  ;;  %v2970_v17 = vpop.f32.mrb[2].mxu0 }
 0x18c   :  { %v1306_v10 = vsel %vm1301_vm2, %v1275_v46, 0  ;;  %v3303_v47 = vadd.f32 %v2970_v17, %v4046_v35  ;;  %v1192_v44 = vpop.f32.mrb[3].mxu0 }
 0x18d   :  { %v4052_v8 = vand.u32 4294901760, %v1306_v10  ;;  %v1303_v60 = vsel %vm1301_vm2, %v1274_v6, 0  ;;  %v3304_v16 = vadd.f32 %v4046_v35, %v1192_v44 }
 0x18e   :  { %v4056_v34 = vand.u32 4294901760, %v1303_v60  ;;  %v1277_v18 = vmax.f32 %v3303_v47, 0.0 }
 0x18f   :  { %v4059_v27 = vsub.f32 %v1306_v10, %v4052_v8  ;;  %v1276_v28 = vmax.f32 %v3304_v16, 0.0  ;;  %v2973_v36 = vpop.f32.mrb[4].mxu0 }
 0x190   :  { %v4062_v52 = vsub.f32 %v1303_v60, %v4056_v34  ;;  %v1312_v63 = vsel %vm1301_vm2, %v1277_v18, 0  ;;  %v3305_v19 = vadd.f32 %v2973_v36, %v4046_v35  ;;  %v1204_v54 = vpop.f32.mrb[5].mxu0 }
 0x191   :  { %v4066_v58 = vand.u32 4294901760, %v1312_v63  ;;  %v1309_v4 = vsel %vm1301_vm2, %v1276_v28, 0  ;;  %v3306_v56 = vadd.f32 %v4046_v35, %v1204_v54  ;;  %v1431_v0 = vand.u32 4294901760, %v4059_v27 }
 0x192   :  { %v4071_v30 = vand.u32 4294901760, %v1309_v4  ;;  %v1279_v40 = vmax.f32 %v3305_v19, 0.0  ;;  %v1421_v41 = vand.u32 4294901760, %v4062_v52 }
 0x193   :  { %v4075_v45 = vsub.f32 %v1312_v63, %v4066_v58  ;;  %v1278_v50 = vmax.f32 %v3306_v56, 0.0  ;;  %v2976_v62 = vpop.f32.mrb[6].mxu0  ;;  %v1432_v38 = vsub.f32 %v4059_v27, %v1431_v0 }
 0x194   :  { %v4081_v14 = vsub.f32 %v1309_v4, %v4071_v30  ;;  %v1318_v21 = vsel %vm1301_vm2, %v1279_v40, 0  ;;  %v3307_v22 = vadd.f32 %v2976_v62, %v4046_v35  ;;  %v1216_v23 = vpop.f32.mrb[7].mxu0  ;;  %v1422_v31 = vsub.f32 %v4062_v52, %v1421_v41 }
 0x195   :  { %v4088_v32 = vand.u32 4294901760, %v1318_v21  ;;  %v1315_v37 = vsel %vm1301_vm2, %v1278_v50, 0  ;;  %v3308_v39 = vadd.f32 %v4046_v35, %v1216_v23  ;;  %v1433_v5 = vand.u32 4294901760, %v1432_v38 }
 0x196   :  { %v4092_v20 = vand.u32 4294901760, %v1315_v37  ;;  %v1281_v33 = vmax.f32 %v3307_v22, 0.0  ;;  %v1423_v43 = vand.u32 4294901760, %v1422_v31  ;;  %v1441_v51 = vand.u32 4294901760, %v4081_v14 }
 0x197   :  { %v4096_v11 = vsub.f32 %v1318_v21, %v4088_v32  ;;  %v1280_v25 = vmax.f32 %v3308_v39, 0.0  ;;  %v2979_v9 = vpop.f32.mrb[8].mxu0  ;;  %v1451_v15 = vand.u32 4294901760, %v4075_v45 }
 0x198   :  { %v4100_v57 = vsub.f32 %v1315_v37, %v4092_v20  ;;  %v1324_v59 = vsel %vm1301_vm2, %v1281_v33, 0  ;;  %v3309_v2 = vadd.f32 %v2979_v9, %v4046_v35  ;;  %v1228_v46 = vpop.f32.mrb[9].mxu0  ;;  %2997 = vmatprep.mubr.f32.mxu1 %v1423_v43  ;;  %v1442_v6 = vsub.f32 %v4081_v14, %v1441_v51 }
 0x199   :  { %v4107_v17 = vand.u32 4294901760, %v1324_v59  ;;  %v1321_v10 = vsel %vm1301_vm2, %v1280_v25, 0  ;;  %v3310_v47 = vadd.f32 %v4046_v35, %v1228_v46  ;;  %2998 = vmatmul.mubr.f32.vlgmr.msra.gmra.mrb[0].mxu1 %v1433_v5  ;;  %v1452_v44 = vsub.f32 %v4075_v45, %v1451_v15 }
 0x19a   :  { %v4114_v60 = vand.u32 4294901760, %v1321_v10  ;;  %v1283_v16 = vmax.f32 %v3309_v2, 0.0  ;;  %3264 = vmatpush3.bf16.msra.mxu1 %v4018_v55  ;;  %v1443_v18 = vand.u32 4294901760, %v1442_v6  ;;  %v1461_v28 = vand.u32 4294901760, %v4100_v57 }
 0x19b   :  { %v4119_v36 = vsub.f32 %v1324_v59, %v4107_v17  ;;  %v1282_v63 = vmax.f32 %v3310_v47, 0.0  ;;  %v2982_v19 = vpop.f32.mrb[10].mxu0  ;;  %v1453_v54 = vand.u32 4294901760, %v1452_v44  ;;  %v1471_v4 = vand.u32 4294901760, %v4096_v11  ;;  %3266 = vmatprep.subr.bf16.mxu1 %v4033_v26 }
 0x19c   :  { %v4124_v56 = vsub.f32 %v1321_v10, %v4114_v60  ;;  %v1330_v40 = vsel %vm1301_vm2, %v1283_v16, 0  ;;  %v3311_v55 = vadd.f32 %v2982_v19, %v4046_v35  ;;  %v1240_v50 = vpop.f32.mrb[11].mxu0  ;;  %3000 = vmatprep.mubr.f32.mxu1 %v1443_v18  ;;  %v1462_v62 = vsub.f32 %v4100_v57, %v1461_v28 }
 0x19d   :  { %v4131_v38 = vand.u32 4294901760, %v1330_v40  ;;  %v1327_v21 = vsel %vm1301_vm2, %v1282_v63, 0  ;;  %v3312_v22 = vadd.f32 %v4046_v35, %v1240_v50  ;;  %3001 = vmatmul.mubr.f32.gmra.mrb[2].mxu1 %v1453_v54  ;;  %v1472_v23 = vsub.f32 %v4096_v11, %v1471_v4 }
 0x19e   :  { %v4138_v31 = vand.u32 4294901760, %v1327_v21  ;;  %v1285_v37 = vmax.f32 %v3311_v55, 0.0  ;;  %v1463_v39 = vand.u32 4294901760, %v1462_v62  ;;  %v1481_v33 = vand.u32 4294901760, %v4124_v56  ;;  %3268 = vmatpush3.bf16.msra.mxu1 %v4033_v26 }
 0x19f   :  { %v4143_v43 = vsub.f32 %v1330_v40, %v4131_v38  ;;  %v1284_v25 = vmax.f32 %v3312_v22, 0.0  ;;  %v2985_v9 = vpop.f32.mrb[12].mxu0  ;;  %v1473_v5 = vand.u32 4294901760, %v1472_v23  ;;  %v1491_v59 = vand.u32 4294901760, %v4119_v36  ;;  %3270 = vmatprep.subr.bf16.mxu1 %v4037_v12 }
 0x1a0   :  { %v4148_v2 = vsub.f32 %v1327_v21, %v4138_v31  ;;  %v1336_v46 = vsel %vm1301_vm2, %v1285_v37, 0  ;;  %v3313_v6 = vadd.f32 %v2985_v9, %v4046_v35  ;;  %v1252_v10 = vpop.f32.mrb[13].mxu0  ;;  %3003 = vmatprep.mubr.f32.mxu1 %v1463_v39  ;;  %v1482_v26 = vsub.f32 %v4124_v56, %v1481_v33 }
 0x1a1   :  { %v4155_v47 = vand.u32 4294901760, %v1336_v46  ;;  %v1333_v44 = vsel %vm1301_vm2, %v1284_v25, 0  ;;  %v3314_v16 = vadd.f32 %v4046_v35, %v1252_v10  ;;  %3004 = vmatmul.mubr.f32.gmra.mrb[4].mxu1 %v1473_v5  ;;  %v1492_v18 = vsub.f32 %v4119_v36, %v1491_v59 }
 0x1a2   :  { %v4162_v63 = vand.u32 4294901760, %v1333_v44  ;;  %v1287_v19 = vmax.f32 %v3313_v6, 0.0  ;;  %v1483_v54 = vand.u32 4294901760, %v1482_v26  ;;  %v4431_v40 = vand.u32 4294901760, %v4148_v2 }
 0x1a3   :  { %v4166_v55 = vsub.f32 %v1336_v46, %v4155_v47  ;;  %v1286_v50 = vmax.f32 %v3314_v16, 0.0  ;;  %v2988_v62 = vpop.f32.mrb[14].mxu0  ;;  %v1493_v21 = vand.u32 4294901760, %v1492_v18  ;;  %v4430_v22 = vand.u32 4294901760, %v4143_v43 }
 0x1a4   :  { %v4170_v23 = vsub.f32 %v1333_v44, %v4162_v63  ;;  %v1342_v37 = vsel %vm1301_vm2, %v1287_v19, 0  ;;  %v3315_v39 = vadd.f32 %v2988_v62, %v4046_v35  ;;  %v1264_v25 = vpop.f32.mrb[15].mxu0  ;;  %3006 = vmatprep.mubr.f32.mxu1 %v1483_v54  ;;  %v1502_v9 = vsub.f32 %v4148_v2, %v4431_v40 }
 0x1a5   :  { %v4177_v5 = vand.u32 4294901760, %v1342_v37  ;;  %v1339_v46 = vsel %vm1301_vm2, %v1286_v50, 0  ;;  %v3316_v6 = vadd.f32 %v4046_v35, %v1264_v25  ;;  %3007 = vmatmul.mubr.f32.gmra.mrb[6].mxu1 %v1493_v21  ;;  %v1512_v10 = vsub.f32 %v4143_v43, %v4430_v22 }
 0x1a6   :  { %v4184_v26 = vand.u32 4294901760, %v1339_v46  ;;  %v1289_v44 = vmax.f32 %v3315_v39, 0.0  ;;  %v1503_v16 = vand.u32 4294901760, %v1502_v9  ;;  %v4428_v18 = vand.u32 4294901760, %v4170_v23 }
 0x1a7   :  { %v4188_v19 = vsub.f32 %v1342_v37, %v4177_v5  ;;  %v1288_v54 = vmax.f32 %v3316_v6, 0.0  ;;  %v1513_v62 = vand.u32 4294901760, %v1512_v10  ;;  %v4429_v50 = vand.u32 4294901760, %v4166_v55 }
 0x1a8   :  { %v4192_v35 = vsub.f32 %v1339_v46, %v4184_v26  ;;  %v1348_v21 = vsel %vm1301_vm2, %v1289_v44, 0  ;;  %3009 = vmatprep.mubr.f32.mxu1 %v1503_v16  ;;  %v1522_v39 = vsub.f32 %v4170_v23, %v4428_v18  ;;  %v4445_v49 = vand.u32 4294901760, %v4148_v2 }
 0x1a9   :  { %v4198_v25 = vand.u32 4294901760, %v1348_v21  ;;  %v1345_v9 = vsel %vm1301_vm2, %v1288_v54, 0  ;;  %3010 = vmatmul.mubr.f32.gmra.mrb[8].mxu1 %v1513_v62  ;;  %v1532_v37 = vsub.f32 %v4166_v55, %v4429_v50  ;;  %v4432_v6 = vand.u32 4294901760, %v4188_v19 }
 0x1aa   :  { %v4205_v46 = vand.u32 4294901760, %v1345_v9  ;;  %v1523_v10 = vand.u32 4294901760, %v1522_v39  ;;  %v1541_v44 = vand.u32 4294901760, %v4192_v35  ;;  %v4448_v61 = vand.u32 4294901760, %v4166_v55 }
 0x1ab   :  { %v4209_v16 = vsub.f32 %v1348_v21, %v4198_v25  ;;  %v1533_v18 = vand.u32 4294901760, %v1532_v37  ;;  %v1552_v54 = vsub.f32 %v4188_v19, %v4432_v6  ;;  %v4449_v1 = vand.u32 4294901760, %v4188_v19 }
 0x1ac   :  { %v4215_v62 = vsub.f32 %v1345_v9, %v4205_v46  ;;  %3012 = vmatprep.mubr.f32.mxu1 %v1523_v10  ;;  %v1542_v50 = vsub.f32 %v4192_v35, %v1541_v44 }
 0x1ad   :  { %3013 = vmatmul.mubr.f32.gmra.mrb[10].mxu1 %v1533_v18  ;;  %v1571_v39 = vand.u32 4294901760, %v4209_v16  ;;  %v1553_v40 = vand.u32 4294901760, %v1552_v54 }
 0x1ae   :  { %v1543_v22 = vand.u32 4294901760, %v1542_v50  ;;  %v1561_v21 = vand.u32 4294901760, %v4215_v62 }
 0x1af   :  { %v1572_v37 = vsub.f32 %v4209_v16, %v1571_v39 }
 0x1b0   :  { %3015 = vmatprep.mubr.f32.mxu1 %v1543_v22  ;;  %v1562_v9 = vsub.f32 %v4215_v62, %v1561_v21 }
 0x1b1   :  { %3016 = vmatmul.mubr.f32.gmra.mrb[12].mxu1 %v1553_v40  ;;  %v1573_v6 = vand.u32 4294901760, %v1572_v37 }
 0x1b2   :  { %v1563_v10 = vand.u32 4294901760, %v1562_v9 }
 0x1b4   :  { %3018 = vmatprep.mubr.f32.mxu1 %v1563_v10 }
 0x1b5   :  { %3019 = vmatmul.mubr.f32.gmra.mrb[14].mxu1 %v1573_v6 }
 0x1b6   :  { %3029 = vmatprep.mubr.f32.mxu1 %v4056_v34 }
 0x1b9   :  { %3030 = vmatmul.mubr.f32.vlgmr.msra.gmra.mrb[0].mxu1 %v4052_v8 }
 0x1ba   :  { %3032 = vmatprep.mubr.f32.mxu1 %v4071_v30  ;;  %3272 = vmatpush3.bf16.msra.mxu1 %v4037_v12  ;;  %v10_v12 = vstv %s4414_s4 }
 0x1bb   :  { %3274 = vmatprep.subr.bf16.mxu1 %v4041_v29  ;;  %11 = vst [vmem:[#allocation2] sm:$0x1] %v10_v12 }
 0x1bd   :  { %3033 = vmatmul.mubr.f32.gmra.mrb[2].mxu1 %v4066_v58 }
 0x1be   :  { %3035 = vmatprep.mubr.f32.mxu1 %v4092_v20  ;;  %3276 = vmatpush3.bf16.msra.mxu1 %v4041_v29  ;;  %v3285_v29 = vpack.c.bf16 %v1589_v13, %v1582_v53  ;;  %v4446_v53 = vand.u32 4294901760, %v4143_v43  ;;  %v4447_v13 = vand.u32 4294901760, %v4170_v23 }
 0x1bf   :  { %3278 = vmatprep.subr.bf16.mxu1 %v3992_v24 }
 0x1c1   :  { %3036 = vmatmul.mubr.f32.gmra.mrb[4].mxu1 %v4088_v32 }
 0x1c2   :  { %3038 = vmatprep.mubr.f32.mxu1 %v4114_v60 }
 0x1c5   :  { %3039 = vmatmul.mubr.f32.gmra.mrb[6].mxu1 %v4107_v17 }
 0x1c6   :  { %3041 = vmatprep.mubr.f32.mxu1 %v4138_v31 }
 0x1c9   :  { %3042 = vmatmul.mubr.f32.gmra.mrb[8].mxu1 %v4131_v38 }
 0x1ca   :  { %3044 = vmatprep.mubr.f32.mxu1 %v4162_v63 }
 0x1cd   :  { %3045 = vmatmul.mubr.f32.gmra.mrb[10].mxu1 %v4155_v47 }
 0x1ce   :  { %3047 = vmatprep.mubr.f32.mxu1 %v4184_v26 }
 0x1d1   :  { %3048 = vmatmul.mubr.f32.gmra.mrb[12].mxu1 %v4177_v5 }
 0x1d2   :  { %3050 = vmatprep.mubr.f32.mxu1 %v4205_v46 }
 0x1d5   :  { %3051 = vmatmul.mubr.f32.gmra.mrb[14].mxu1 %v4198_v25 }
 0x1d6   :  { %3061 = vmatprep.mubr.f32.mxu1 %v4062_v52 }
 0x1d9   :  { %3062 = vmatmul.mubr.f32.vlgmr.msra.gmra.mrb[0].mxu1 %v4059_v27 }
 0x1da   :  { %3064 = vmatprep.mubr.f32.mxu1 %v4081_v14  ;;  %3280 = vmatpush3.bf16.msra.mxu1 %v3992_v24 }
 0x1db   :  { %3282 = vmatprep.subr.bf16.mxu1 %v4002_v42 }
 0x1dd   :  { %3065 = vmatmul.mubr.f32.gmra.mrb[2].mxu1 %v4075_v45 }
 0x1de   :  { %3067 = vmatprep.mubr.f32.mxu1 %v4100_v57  ;;  %3284 = vmatpush3.bf16.msra.mxu1 %v4002_v42 }
 0x1df   :  { %3286 = vmatprep.subr.bf16.mxu1 %v3285_v29 }
 0x1e1   :  { %3068 = vmatmul.mubr.f32.gmra.mrb[4].mxu1 %v4096_v11 }
 0x1e2   :  { %3070 = vmatprep.mubr.f32.mxu1 %v4124_v56 }
 0x1e5   :  { %3071 = vmatmul.mubr.f32.gmra.mrb[6].mxu1 %v4119_v36 }
 0x1e6   :  { %3073 = vmatprep.mubr.f32.mxu1 %v4148_v2 }
 0x1e9   :  { %3074 = vmatmul.mubr.f32.gmra.mrb[8].mxu1 %v4143_v43 }
 0x1ea   :  { %3076 = vmatprep.mubr.f32.mxu1 %v4170_v23 }
 0x1ed   :  { %3077 = vmatmul.mubr.f32.gmra.mrb[10].mxu1 %v4166_v55 }
 0x1ee   :  { %3079 = vmatprep.mubr.f32.mxu1 %v4192_v35 }
 0x1f1   :  { %3080 = vmatmul.mubr.f32.gmra.mrb[12].mxu1 %v4188_v19 }
 0x1f2   :  { %3082 = vmatprep.mubr.f32.mxu1 %v4215_v62 }
 0x1f5   :  { %3083 = vmatmul.mubr.f32.gmra.mrb[14].mxu1 %v4209_v16 }
 0x1f6   :  { %3093 = vmatprep.mubr.f32.mxu1 %v1421_v41 }
 0x1f9   :  { %3094 = vmatmul.mubr.f32.vlgmr.msra.gmra.mrb[0].mxu1 %v1431_v0 }
 0x1fa   :  { %3096 = vmatprep.mubr.f32.mxu1 %v1441_v51  ;;  %3288 = vmatpush3.bf16.msra.mxu1 %v3285_v29 }
 0x1fb   :  { %3290 = vmatprep.subr.bf16.mxu1 %v3289_v48 }
 0x1fd   :  { %3097 = vmatmul.mubr.f32.gmra.mrb[2].mxu1 %v1451_v15 }
 0x1fe   :  { %3099 = vmatprep.mubr.f32.mxu1 %v1461_v28  ;;  %3292 = vmatpush3.bf16.msra.mxu1 %v3289_v48 }
 0x1ff   :  { %3294 = vmatprep.subr.bf16.mxu1 %v3992_v24 }
 0x201   :  { %3100 = vmatmul.mubr.f32.gmra.mrb[4].mxu1 %v1471_v4 }
 0x202   :  { %3102 = vmatprep.mubr.f32.mxu1 %v1481_v33 }
 0x205   :  { %3103 = vmatmul.mubr.f32.gmra.mrb[6].mxu1 %v1491_v59 }
 0x206   :  { %3105 = vmatprep.mubr.f32.mxu1 %v4445_v49 }
 0x209   :  { %3106 = vmatmul.mubr.f32.gmra.mrb[8].mxu1 %v4446_v53 }
 0x20a   :  { %3108 = vmatprep.mubr.f32.mxu1 %v4447_v13 }
 0x20d   :  { %3109 = vmatmul.mubr.f32.gmra.mrb[10].mxu1 %v4448_v61 }
 0x20e   :  { %3111 = vmatprep.mubr.f32.mxu1 %v1541_v44 }
 0x211   :  { %3112 = vmatmul.mubr.f32.gmra.mrb[12].mxu1 %v4449_v1 }
 0x212   :  { %3114 = vmatprep.mubr.f32.mxu1 %v1561_v21 }
 0x215   :  { %3115 = vmatmul.mubr.f32.gmra.mrb[14].mxu1 %v1571_v39 }
 0x216   :  { %3125 = vmatprep.mubr.f32.mxu1 %v4056_v34 }
 0x219   :  { %3126 = vmatmul.mubr.f32.vlgmr.msra.gmra.mrb[0].mxu1 %v4052_v8 }
 0x21a   :  { %3128 = vmatprep.mubr.f32.mxu1 %v4071_v30  ;;  %3296 = vmatpush3.bf16.msra.mxu1 %v3992_v24  ;;  %v2502_v24 = vld [vmem:[#allocation2] ss:$0 sm:$0xff] }
 0x21b   :  { %3298 = vmatprep.subr.bf16.mxu1 %v4002_v42 }
 0x21d   :  { %3129 = vmatmul.mubr.f32.gmra.mrb[2].mxu1 %v4066_v58 }
 0x21e   :  { %3131 = vmatprep.mubr.f32.mxu1 %v4092_v20  ;;  %3300 = vmatpush3.bf16.msra.mxu1 %v4002_v42 }
 0x221   :  { %3132 = vmatmul.mubr.f32.gmra.mrb[4].mxu1 %v4088_v32 }
 0x222   :  { %3134 = vmatprep.mubr.f32.mxu1 %v4114_v60 }
 0x225   :  { %3135 = vmatmul.mubr.f32.gmra.mrb[6].mxu1 %v4107_v17 }
 0x226   :  { %3137 = vmatprep.mubr.f32.mxu1 %v4138_v31 }
 0x229   :  { %3138 = vmatmul.mubr.f32.gmra.mrb[8].mxu1 %v4131_v38 }
 0x22a   :  { %3140 = vmatprep.mubr.f32.mxu1 %v4162_v63 }
 0x22d   :  { %3141 = vmatmul.mubr.f32.gmra.mrb[10].mxu1 %v4155_v47 }
 0x22e   :  { %3143 = vmatprep.mubr.f32.mxu1 %v4184_v26 }
 0x231   :  { %3144 = vmatmul.mubr.f32.gmra.mrb[12].mxu1 %v4177_v5 }
 0x232   :  { %3146 = vmatprep.mubr.f32.mxu1 %v4205_v46 }
 0x235   :  { %3147 = vmatmul.mubr.f32.gmra.mrb[14].mxu1 %v4198_v25 }
 0x236   :  { %3157 = vmatprep.mubr.f32.mxu1 %v4056_v34 }
 0x239   :  { %3158 = vmatmul.mubr.f32.vlgmr.msra.gmra.mrb[0].mxu1 %v4052_v8 }
 0x23a   :  { %3160 = vmatprep.mubr.f32.mxu1 %v4071_v30 }
 0x23d   :  { %3161 = vmatmul.mubr.f32.gmra.mrb[2].mxu1 %v4066_v58 }
 0x23e   :  { %3163 = vmatprep.mubr.f32.mxu1 %v4092_v20 }
 0x241   :  { %3164 = vmatmul.mubr.f32.gmra.mrb[4].mxu1 %v4088_v32 }
 0x242   :  { %3166 = vmatprep.mubr.f32.mxu1 %v4114_v60 }
 0x245   :  { %3167 = vmatmul.mubr.f32.gmra.mrb[6].mxu1 %v4107_v17 }
 0x246   :  { %3169 = vmatprep.mubr.f32.mxu1 %v4138_v31 }
 0x249   :  { %3170 = vmatmul.mubr.f32.gmra.mrb[8].mxu1 %v4131_v38 }
 0x24a   :  { %3172 = vmatprep.mubr.f32.mxu1 %v4162_v63 }
 0x24d   :  { %3173 = vmatmul.mubr.f32.gmra.mrb[10].mxu1 %v4155_v47 }
 0x24e   :  { %3175 = vmatprep.mubr.f32.mxu1 %v4184_v26 }
 0x251   :  { %3176 = vmatmul.mubr.f32.gmra.mrb[12].mxu1 %v4177_v5 }
 0x252   :  { %3178 = vmatprep.mubr.f32.mxu1 %v4205_v46 }
 0x255   :  { %3179 = vmatmul.mubr.f32.gmra.mrb[14].mxu1 %v4198_v25 }
 0x30c   :  { %v3159_v42 = vpop.f32.mrb[0].mxu1 }
 0x30d   :  { %v3317_v3 = vadd.f32 %v3159_v42, %v2502_v24  ;;  %v2386_v7 = vpop.f32.mrb[1].mxu1 }
 0x30e   :  { %v3318_v8 = vadd.f32 %v2502_v24, %v2386_v7 }
 0x30f   :  { %2482 = vst.msk [vmem:[%s4415_s5 + $0x8] sm:$0xff] %vm2480_vm3, %v3317_v3 }
 0x310   :  { %2481 = vst.msk [vmem:[%s4415_s5] sm:$0xff] %vm2480_vm3, %v3318_v8  ;;  %v3162_v34 = vpop.f32.mrb[2].mxu1 }
 0x311   :  { %v3319_v27 = vadd.f32 %v3162_v34, %v2502_v24  ;;  %v2398_v52 = vpop.f32.mrb[3].mxu1 }
 0x312   :  { %v3320_v58 = vadd.f32 %v2502_v24, %v2398_v52 }
 0x313   :  { %2484 = vst.msk [vmem:[%s4415_s5 + $0x18] sm:$0xff] %vm2480_vm3, %v3319_v27 }
 0x314   :  { %2483 = vst.msk [vmem:[%s4415_s5 + $0x10] sm:$0xff] %vm2480_vm3, %v3320_v58  ;;  %v3165_v0 = vpop.f32.mrb[4].mxu1 }
 0x315   :  { %v3321_v30 = vadd.f32 %v3165_v0, %v2502_v24  ;;  %v2410_v41 = vpop.f32.mrb[5].mxu1 }
 0x316   :  { %v3322_v45 = vadd.f32 %v2502_v24, %v2410_v41 }
 0x317   :  { %2486 = vst.msk [vmem:[%s4415_s5 + $0x28] sm:$0xff] %vm2480_vm3, %v3321_v30 }
 0x318   :  { %2485 = vst.msk [vmem:[%s4415_s5 + $0x20] sm:$0xff] %vm2480_vm3, %v3322_v45  ;;  %v3168_v14 = vpop.f32.mrb[6].mxu1 }
 0x319   :  { %v3323_v32 = vadd.f32 %v3168_v14, %v2502_v24  ;;  %v2422_v20 = vpop.f32.mrb[7].mxu1 }
 0x31a   :  { %v3324_v51 = vadd.f32 %v2502_v24, %v2422_v20 }
 0x31b   :  { %2488 = vst.msk [vmem:[%s4415_s5 + $0x38] sm:$0xff] %vm2480_vm3, %v3323_v32 }
 0x31c   :  { %2487 = vst.msk [vmem:[%s4415_s5 + $0x30] sm:$0xff] %vm2480_vm3, %v3324_v51  ;;  %v3171_v11 = vpop.f32.mrb[8].mxu1 }
 0x31d   :  { %v3325_v15 = vadd.f32 %v3171_v11, %v2502_v24  ;;  %v2434_v57 = vpop.f32.mrb[9].mxu1 }
 0x31e   :  { %v3326_v17 = vadd.f32 %v2502_v24, %v2434_v57 }
 0x31f   :  { %2490 = vst.msk [vmem:[%s4415_s5 + $0x48] sm:$0xff] %vm2480_vm3, %v3325_v15 }
 0x320   :  { %2489 = vst.msk [vmem:[%s4415_s5 + $0x40] sm:$0xff] %vm2480_vm3, %v3326_v17  ;;  %v3174_v60 = vpop.f32.mrb[10].mxu1 }
 0x321   :  { %v3327_v28 = vadd.f32 %v3174_v60, %v2502_v24  ;;  %v2446_v36 = vpop.f32.mrb[11].mxu1 }
 0x322   :  { %v3328_v4 = vadd.f32 %v2502_v24, %v2446_v36 }
 0x323   :  { %2492 = vst.msk [vmem:[%s4415_s5 + $0x58] sm:$0xff] %vm2480_vm3, %v3327_v28 }
 0x324   :  { %2491 = vst.msk [vmem:[%s4415_s5 + $0x50] sm:$0xff] %vm2480_vm3, %v3328_v4  ;;  %v3177_v56 = vpop.f32.mrb[12].mxu1 }
 0x325   :  { %v3329_v38 = vadd.f32 %v3177_v56, %v2502_v24  ;;  %v2458_v31 = vpop.f32.mrb[13].mxu1 }
 0x326   :  { %v3330_v33 = vadd.f32 %v2502_v24, %v2458_v31 }
 0x327   :  { %2494 = vst.msk [vmem:[%s4415_s5 + $0x68] sm:$0xff] %vm2480_vm3, %v3329_v38 }
 0x328   :  { %2493 = vst.msk [vmem:[%s4415_s5 + $0x60] sm:$0xff] %vm2480_vm3, %v3330_v33  ;;  %v3180_v43 = vpop.f32.mrb[14].mxu1 }
 0x329   :  { %v3331_v59 = vadd.f32 %v3180_v43, %v2502_v24  ;;  %v2470_v2 = vpop.f32.mrb[15].mxu1 }
 0x32a   :  { %v3332_v47 = vadd.f32 %v2502_v24, %v2470_v2 }
 0x32b   :  { %2496 = vst.msk [vmem:[%s4415_s5 + $0x78] sm:$0xff] %vm2480_vm3, %v3331_v59 }
 0x32c   :  { %2495 = vst.msk [vmem:[%s4415_s5 + $0x70] sm:$0xff] %vm2480_vm3, %v3332_v47 }

</bundles_post_ra>
